<compile_context>
chip_gen: v6e
topology: v6e:2x2x1
jax: 0.10.0
libtpu: 0.0.40
codegen_flags: <defaults>
</compile_context>

<pallas_src>
import jax
import jax.numpy as jnp
from jax.experimental import pallas as pl
from jax.experimental.pallas import tpu as pltpu


def _round_up(x, n):
    return ((x + n - 1) // n) * n


def _linear_kernel(x_ref, w_ref, b_ref, o_ref):
    # x_ref: [tm, K], w_ref: [K, tn] (canonical MXU layout), b_ref: [1, tn], o_ref: [tm, tn]
    acc = jnp.dot(x_ref[...], w_ref[...], preferred_element_type=jnp.float32)
    o_ref[...] = (acc + b_ref[...].astype(jnp.float32)).astype(o_ref.dtype)


def _vmem_capacity_bytes():
    try:
        return int(pltpu.get_tpu_info().vmem_capacity_bytes)
    except Exception:
        return 64 * 1024 * 1024  # conservative default (v7x per-TC VMEM)


def _choose_tiles(m, k, n, itemsize, budget):
    """Largest row tile (multiple of the dtype's sublane count) that fits `budget`;
    tile N only if the resident [K, tn] weight block would not fit."""
    sublane = max(8, 32 // itemsize)  # 8 f32 / 16 bf16 / 32 int8
    m_r = _round_up(max(m, 1), sublane)

    def fits(tm, tn):
        # x + out double-buffered; weight also counted double-buffered (honest
        # accounting of Pallas' default 2-deep pipeline); bias negligible.
        return itemsize * (2 * tm * k + 2 * k * tn + 2 * tm * tn + 2 * tn) <= budget

    # Prefer the whole output width resident (weight never re-streamed), else
    # shrink tn in multiples of 128 lanes.
    tn_candidates = [n]
    t = 2048
    while t >= 128:
        if t < n:
            tn_candidates.append(t)
        t //= 2
    tn = None
    for cand in tn_candidates:
        if fits(sublane, cand):
            tn = cand
            break
    if tn is None:
        # TODO(synk): add K-dim tiling (accumulator scratch, "arbitrary" axis) for
        # weights whose single [K, 128] column block exceeds VMEM.
        tn = min(n, 128)

    # Largest tm (sublane multiple) under the budget, capped to the problem size.
    rem = budget // itemsize - 2 * k * tn - 2 * tn
    tm = max(sublane, (rem // (2 * (k + tn))) // sublane * sublane)
    tm = min(tm, m_r)
    # Keep >= 2 row blocks when possible: enables DMA/compute overlap and lets the
    # "parallel" axis shard across the 2 TensorCores on v7x.
    if m_r >= 2 * sublane:
        tm = min(tm, _round_up(pl.cdiv(m_r, 2), sublane))
    return tm, tn


def _tiled_linear(x2d, w_kn, bias, *, tile_override=None):
    """out[m, n] = x2d[m, k] @ w_kn[k, n] + bias[n], Pallas-tiled over (m, n)."""
    m, k = x2d.shape
    _, n = w_kn.shape
    itemsize = jnp.dtype(x2d.dtype).itemsize

    capacity = _vmem_capacity_bytes()
    budget = int(capacity * 0.7)
    if tile_override is not None:
        tm, tn = tile_override
    else:
        tm, tn = _choose_tiles(m, k, n, itemsize, budget)

    num_m = pl.cdiv(m, tm)
    num_n = pl.cdiv(n, tn)

    usage = itemsize * (2 * tm * k + 2 * k * tn + 2 * tm * tn + 2 * tn)
    vmem_limit = min(int(capacity * 0.9), usage + (8 << 20))

    b2d = bias.reshape(1, n)

    cost = pl.CostEstimate(
        flops=2 * m * k * n,
        bytes_accessed=itemsize * (m * k + k * n + m * n + n),
        transcendentals=0,
    )

    return pl.pallas_call(
        _linear_kernel,
        out_shape=jax.ShapeDtypeStruct((m, n), x2d.dtype),
        grid_spec=pltpu.PrefetchScalarGridSpec(
            num_scalar_prefetch=0,
            grid=(num_m, num_n),
            in_specs=[
                pl.BlockSpec((tm, k), lambda i, j: (i, 0)),   # x row tile (stays resident over j)
                pl.BlockSpec((k, tn), lambda i, j: (0, j)),   # canonical [K, N] weight tile
                pl.BlockSpec((1, tn), lambda i, j: (0, j)),   # bias tile
            ],
            out_specs=pl.BlockSpec((tm, tn), lambda i, j: (i, j)),
        ),
        compiler_params=pltpu.CompilerParams(
            dimension_semantics=("parallel", "parallel"),  # no cross-iteration carry
            vmem_limit_bytes=vmem_limit,
        ),
        cost_estimate=cost,
    )(x2d, w_kn, b2d)


def add_embedding_forward(x, weight, bias, *, tile_override=None):
    """Pallas implementation of AddEmbedding: nn.Linear(in_features, out_features).

    x:      [..., in_features]
    weight: [out_features, in_features]   (PyTorch convention)
    bias:   [out_features]
    returns [..., out_features]
    """
    out_features, in_features = weight.shape
    orig_shape = x.shape
    x2d = x.reshape(-1, in_features)
    m = x2d.shape[0]
    if m == 0:
        return jnp.zeros((*orig_shape[:-1], out_features), dtype=x.dtype)

    itemsize = jnp.dtype(x.dtype).itemsize
    w_kn = weight.T  # one-time transpose to canonical [K, N]; XLA folds / amortizes it

    # Lane-dense output fold: with out_features < 128 every store would be a masked
    # sub-lane-width vst. View x as (m/fold, fold*in) and contract against a
    # block-diagonal (fold*in, fold*out) weight so output rows span >= 128 lanes.
    fold = 1
    if out_features < 128 and 128 % out_features == 0:
        cand = 128 // out_features
        blowup = cand * cand * in_features * out_features * itemsize
        if m % cand == 0 and blowup <= (4 << 20):
            fold = cand

    if fold > 1:
        x2d = x2d.reshape(m // fold, fold * in_features)  # free (row-major view)
        w_big = jnp.zeros((fold * in_features, fold * out_features), dtype=w_kn.dtype)
        for f in range(fold):
            w_big = w_big.at[
                f * in_features:(f + 1) * in_features,
                f * out_features:(f + 1) * out_features,
            ].set(w_kn)
        w_kn = w_big
        bias = jnp.tile(bias, (fold,))

    out = _tiled_linear(x2d, w_kn, bias, tile_override=tile_override)
    return out.reshape(*orig_shape[:-1], out_features)


def init_linear_params(key, in_features, out_features, dtype=jnp.float32):
    # Deterministic init mirroring nn.Linear's default (uniform +/- 1/sqrt(in)).
    kw, kb = jax.random.split(key)
    bound = 1.0 / (in_features ** 0.5)
    weight = jax.random.uniform(
        kw, (out_features, in_features), dtype=dtype, minval=-bound, maxval=bound
    )
    bias = jax.random.uniform(
        kb, (out_features,), dtype=dtype, minval=-bound, maxval=bound
    )
    return weight, bias


if __name__ == "__main__":
    key = jax.random.PRNGKey(0)
    k_x1, k_p1, k_x2, k_p2 = jax.random.split(key, 4)

    # 1) Module-sized case: exercises the lane-dense fold path (out=64 -> fold=2).
    batch, seq, in_features, out_features = 2, 8, 32, 64
    x = jax.random.normal(k_x1, (batch, seq, in_features), dtype=jnp.float32)
    weight, bias = init_linear_params(k_p1, in_features, out_features)
    out = jax.block_until_ready(add_embedding_forward(x, weight, bias))
    ref = x @ weight.T + bias
    assert out.shape == (batch, seq, out_features)
    assert jnp.allclose(out, ref, atol=1e-5, rtol=1e-5)

    # 2) Small forced-tiling case: partial boundary row block (m=21) + N tiling.
    batch2, seq2, in2, out2 = 3, 7, 32, 256
    x2 = jax.random.normal(k_x2, (batch2, seq2, in2), dtype=jnp.float32)
    weight2, bias2 = init_linear_params(k_p2, in2, out2)
    out_b = jax.block_until_ready(
        add_embedding_forward(x2, weight2, bias2, tile_override=(8, 128))
    )
    ref_b = x2 @ weight2.T + bias2
    assert out_b.shape == (batch2, seq2, out2)
    assert jnp.allclose(out_b, ref_b, atol=1e-5, rtol=1e-5)

    print("KERNEL_OK")
</pallas_src>

<mosaic_0001>
module attributes {stable_mosaic.version = 11 : i64} {
  func.func @_linear_kernel(%arg0: i32, %arg1: i32, %arg2: memref<8x64xf32, #tpu.memory_space<vmem>>, %arg3: memref<64x128xf32, #tpu.memory_space<vmem>>, %arg4: memref<1x128xf32, #tpu.memory_space<vmem>>, %arg5: memref<8x128xf32, #tpu.memory_space<vmem>>) attributes {dimension_semantics = [#tpu.dimension_semantics<parallel>, #tpu.dimension_semantics<parallel>], iteration_bounds = array<i64: 1, 1>, scalar_prefetch = 0 : i64, scratch_operands = 0 : i64, tpu.core_type = #tpu.core_type<tc>, window_params = [{transform_indices = @transform_0, window_bounds = array<i64: 8, 64>}, {transform_indices = @transform_1, window_bounds = array<i64: 64, 128>}, {transform_indices = @transform_2, window_bounds = array<i64: 1, 128>}, {transform_indices = @transform_3, window_bounds = array<i64: 8, 128>}]} {
    %c0 = arith.constant 0 : index
    %c0_0 = arith.constant 0 : index
    %0 = vector.load %arg2[%c0, %c0_0] : memref<8x64xf32, #tpu.memory_space<vmem>>, vector<8x64xf32>
    %c0_1 = arith.constant 0 : index
    %c0_2 = arith.constant 0 : index
    %1 = vector.load %arg3[%c0_1, %c0_2] : memref<64x128xf32, #tpu.memory_space<vmem>>, vector<64x128xf32>
    %cst = arith.constant dense<0.000000e+00> : vector<8x128xf32>
    %2 = tpu.matmul %0, %1, %cst {dimension_numbers = #tpu.dot_dimension_numbers<[1], [0], [0], [1], [0, 0, 1, 1], [], []>} : vector<8x64xf32>, vector<64x128xf32>, vector<8x128xf32> -> vector<8x128xf32>
    %c0_3 = arith.constant 0 : index
    %c0_4 = arith.constant 0 : index
    %3 = vector.load %arg4[%c0_3, %c0_4] : memref<1x128xf32, #tpu.memory_space<vmem>>, vector<1x128xf32>
    %4 = vector.broadcast %3 : vector<1x128xf32> to vector<8x128xf32>
    %5 = arith.addf %2, %4 : vector<8x128xf32>
    %c0_5 = arith.constant 0 : index
    %c0_6 = arith.constant 0 : index
    %6 = vector.load %arg5[%c0_5, %c0_6] : memref<8x128xf32, #tpu.memory_space<vmem>>, vector<8x128xf32>
    tpu.vector_store %arg5[%c0_5, %c0_6], %5 {strides = array<i32>} : memref<8x128xf32, #tpu.memory_space<vmem>>, vector<8x128xf32>,
    return
  }
  func.func @transform_0(%arg0: i32, %arg1: i32) -> (i32, i32) {
    %c0_i32 = arith.constant 0 : i32
    %c0_i32_0 = arith.constant 0 : i32
    return %arg0, %c0_i32 : i32, i32
  }
  func.func @transform_1(%arg0: i32, %arg1: i32) -> (i32, i32) {
    %c0_i32 = arith.constant 0 : i32
    %c0_i32_0 = arith.constant 0 : i32
    return %c0_i32, %arg1 : i32, i32
  }
  func.func @transform_2(%arg0: i32, %arg1: i32) -> (i32, i32) {
    %c0_i32 = arith.constant 0 : i32
    %c0_i32_0 = arith.constant 0 : i32
    return %c0_i32, %arg1 : i32, i32
  }
  func.func @transform_3(%arg0: i32, %arg1: i32) -> (i32, i32) {
    %c0_i32 = arith.constant 0 : i32
    return %arg0, %arg1 : i32, i32
  }
}

</mosaic_0001>

<bundles_post_ra>
// kernel: tpu_custom_call.1
= control target key start
LH: loop header
LB: loop body
LE: loop exit
PB: predicated region body
PF: predicated region fallthrough
CT: control target
= control target key end

     0   :  { %8 = vsyncpa [#allocation3], 0  ;;  %s290_s0 = inlined_call_operand.hbm [shape: f32[8,64], index: 0, kind: input, shape index: {}]   ;;  %s291_s1 = inlined_call_operand.hbm [shape: f32[64,128], index: 1, kind: input, shape index: {}]   ;;  %s292_s2 = inlined_call_operand.vmem [shape: f32[1,128], index: 2, kind: input, shape index: {}]   ;;  %s293_s3 = inlined_call_operand.hbm [shape: f32[8,128], index: 3, kind: output, shape index: {}]  }
   0x1   :  { %9 = vsyncpa [#allocation6], 0 }
   0x2   :  { %10 = vsyncpa [#allocation4], 0  ;;  %s251_s12 = smov [#allocation2]   ;;  %s252_s14 = smov [#allocation5]  }
   0x3   :  { %s17_s13 = sshll.u32 %s251_s12, 4  ;;  %s26_s15 = sshll.u32 %s252_s14, 4  ;;  %s18_s13 = int_to_ptr.vmem [resolvable:$true] %s17_s13  ;;  %s27_s15 = int_to_ptr.vmem [resolvable:$true] %s26_s15 }
   0x4   :  { %s193_s16 = scalar_lea.vmem %s18_s13, 128  ;;  %p198_p1 = scmp.lt.s32.totalorder %s18_s13, %s18_s13 }
   0x5   :  { %p194_p0 = scmp.ne.s32.totalorder %s18_s13, %s193_s16  ;;  %p199_p2 = scmp.lt.s32.totalorder %s193_s16, %s193_s16 }
   0x7   :  { %p200_p3 = por %p199_p2, %p198_p1 }
   0x9   :  { %p201_p4 = pnand %p200_p3, %p194_p0 }
   0xb   :  { %204 = shalt.err (!%p201_p4)
}
   0xc   :  { %20 = dma.hbm_to_vmem [thread:$0]  %s290_s0, 128, %s18_s13, [#allocation3]  }
   0xd   :  { %s213_s19 = scalar_lea.vmem %s27_s15, 1024  ;;  %p218_p6 = scmp.lt.s32.totalorder %s27_s15, %s27_s15 }
   0xe   :  { %p214_p5 = scmp.ne.s32.totalorder %s27_s15, %s213_s19  ;;  %p219_p7 = scmp.lt.s32.totalorder %s213_s19, %s213_s19 }
  0x10   :  { %p220_p8 = por %p219_p7, %p218_p6 }
  0x12   :  { %p221_p9 = pnand %p220_p8, %p214_p5 }
  0x14   :  { %224 = shalt.err (!%p221_p9)
}
  0x15   :  { %s253_s20 = smov 128   ;;  %s254_s21 = smov 8  }
  0x16   :  { %32 = dma.hbm_to_vmem [thread:$0]  %s291_s1, 1024, %s27_s15, [#allocation6], %s253_s20, %s253_s20, %s254_s21  }
  0x17   :  { %245 = dma.done.wait [#allocation3], 128  }
  0x18   :  { %246 = vsyncadd [#allocation3], 4294967168 }
  0x19   :  { %247 = dma.done.wait [#allocation6], 1024  }
  0x1a   :  { %248 = vsyncadd [#allocation6], 4294966272  ;;  %v255_v0 = vmov 0.0   ;;  %vm256_vm0 = vmmov 0   ;;  %v49_v1 = vld [vmem:[#allocation5 + $0x38] sm:$0xff]  ;;  %v48_v2 = vld [vmem:[#allocation5 + $0x30] sm:$0xff] }
  0x1b   :  { %159 = vmatprep.subr.mxu0 %v255_v0  ;;  %175 = vmatprep.mubr.msk.f32.mxu0 %vm256_vm0, %v255_v0  ;;  %v47_v3 = vld [vmem:[#allocation5 + $0x28] sm:$0xff]  ;;  %v46_v4 = vld [vmem:[#allocation5 + $0x20] sm:$0xff]  ;;  %v45_v5 = vld [vmem:[#allocation5 + $0x18] sm:$0xff]  ;;  %vm57_vm1 = vcmask 523264   ;;  %s257_s24 = smov [#allocation7]  }
  0x1c   :  { %160 = vmatpush3.msra.mxu0 %v49_v1  ;;  %v44_v6 = vld [vmem:[#allocation5 + $0x10] sm:$0xff]  ;;  %v43_v7 = vld [vmem:[#allocation5 + $0x8] sm:$0xff]  ;;  %v42_v8 = vld [vmem:[#allocation5] sm:$0xff]  ;;  %s138_s25 = sshll.u32 %s257_s24, 4  ;;  %s139_s25 = int_to_ptr.vmem [resolvable:$true] %s138_s25 }
  0x1d   :  { %161 = vmatprep.subr.mxu0 %v255_v0  ;;  %v41_v9 = vld [vmem:[#allocation2] sm:$0xff]  ;;  %s225_s26 = scalar_lea.vmem %s139_s25, 128  ;;  %p230_p11 = scmp.lt.s32.totalorder %s139_s25, %s139_s25 }
  0x1e   :  { %162 = vmatpush3.msra.mxu0 %v48_v2  ;;  %v148_v10 = vld [vmem:[%s292_s2] ss:$0 sm:$0xff]  ;;  %p226_p10 = scmp.ne.s32.totalorder %s139_s25, %s225_s26  ;;  %p231_p12 = scmp.lt.s32.totalorder %s225_s26, %s225_s26 }
  0x1f   :  { %163 = vmatprep.subr.mxu0 %v255_v0 }
  0x20   :  { %164 = vmatpush3.msra.mxu0 %v47_v3  ;;  %p232_p13 = por %p231_p12, %p230_p11 }
  0x21   :  { %165 = vmatprep.subr.mxu0 %v255_v0 }
  0x22   :  { %166 = vmatpush3.msra.mxu0 %v46_v4  ;;  %p233_p0 = pnand %p232_p13, %p226_p10 }
  0x23   :  { %167 = vmatprep.subr.mxu0 %v255_v0 }
  0x24   :  { %168 = vmatpush3.msra.mxu0 %v45_v5 }
  0x25   :  { %169 = vmatprep.subr.mxu0 %v255_v0 }
  0x26   :  { %170 = vmatpush3.msra.mxu0 %v44_v6 }
  0x27   :  { %171 = vmatprep.subr.mxu0 %v255_v0 }
  0x28   :  { %172 = vmatpush3.msra.mxu0 %v43_v7 }
  0x29   :  { %173 = vmatprep.subr.mxu0 %v255_v0 }
  0x2a   :  { %174 = vmatpush3.msra.mxu0 %v42_v8 }
  0x2b   :  { %176 = vmatmul.mubr.msk.f32.vlgmr.msra.gmra.mxu0 %vm57_vm1, %v41_v9 }
  0xeb   :  { %v127_v11 = vpop.f32.mrf.mxu0 }
  0xec   :  { %v128_v12 = vadd.f32 %v148_v10, %v127_v11 }
  0xed   :  { %v177_v13 = vpop.f32.mrf.mxu0 }
  0xee   :  { %131 = vst [vmem:[#allocation7] sm:$0xff] %v128_v12 }
  0xef   :  { %236 = shalt.err (!%p233_p0)
}
  0xf0   :  { %141 = dma.vmem_to_hbm [thread:$0]  %s139_s25, 128, %s293_s3, [#allocation4]  }
  0xf1   :  { %249 = dma.done.wait [#allocation4], 128  }
  0xf2   :  { %250 = vsyncadd [#allocation4], 4294967168 }
  0xf3   :  { %145 = vsyncpa [#allocation3], 1 }
  0xf4   :  { %146 = vsyncpa [#allocation6], 1 }
  0xf5   :  { %147 = vsyncpa [#allocation4], 1 }

</bundles_post_ra>
